<compile_context>
chip_gen: v6e
topology: v6e:2x2x1
jax: 0.10.0
libtpu: 0.0.40
codegen_flags: <defaults>
</compile_context>

<pallas_src>
import functools

import jax
import jax.numpy as jnp
from jax.experimental import pallas as pl
from jax.experimental.pallas import tpu as pltpu


LANE = 128


# ---------------------------------------------------------------------------
# Kernel
# ---------------------------------------------------------------------------
def dqn_mlp_kernel(x_ref, w1_ref, b1_ref, w2_ref, b2_ref, w3_ref, b3_ref,
                   o_ref):
    x = x_ref[...]                                     # (TB, Din) bf16

    # fc1 + ReLU  (f32 MXU accumulation, f32 elementwise -- v5e friendly)
    h1 = jnp.dot(x, w1_ref[...],
                 preferred_element_type=jnp.float32) + b1_ref[...]
    h1 = jnp.maximum(h1, 0.0)

    # fc2 + ReLU
    h2 = jnp.dot(h1.astype(jnp.bfloat16), w2_ref[...],
                 preferred_element_type=jnp.float32) + b2_ref[...]
    h2 = jnp.maximum(h2, 0.0)

    # fc3 (no activation) -- lane-dense (TB, 128) bf16 store (halves writeback)
    o = jnp.dot(h2.astype(jnp.bfloat16), w3_ref[...],
                preferred_element_type=jnp.float32) + b3_ref[...]
    o_ref[...] = o.astype(o_ref.dtype)


# ---------------------------------------------------------------------------
# Setup / wrapper
# ---------------------------------------------------------------------------
def _round_up(x, m):
    return ((x + m - 1) // m) * m


def _pad_to(a, shape):
    return jnp.pad(a, [(0, t - s) for s, t in zip(a.shape, shape)])


def prepare_params(params):
    """Zero-pad feature dims to 128 lanes; matmul operands -> bf16, biases f32.

    Zero padding (plus ReLU) guarantees the padded lanes of every
    intermediate and of the output are exactly zero.
    """
    w1, b1, w2, b2, w3, b3 = params          # w: (in, out), b: (1, out)
    h1 = _round_up(w1.shape[1], LANE)
    h2 = _round_up(w2.shape[1], LANE)
    na = _round_up(w3.shape[1], LANE)

    w1p = _pad_to(w1, (w1.shape[0], h1)).astype(jnp.bfloat16)   # (24, 128)
    b1p = _pad_to(b1, (1, h1)).astype(jnp.float32)
    w2p = _pad_to(w2, (h1, h2)).astype(jnp.bfloat16)            # (128, 128)
    b2p = _pad_to(b2, (1, h2)).astype(jnp.float32)
    w3p = _pad_to(w3, (h2, na)).astype(jnp.bfloat16)            # (128, 128)
    b3p = _pad_to(b3, (1, na)).astype(jnp.float32)
    return (w1p, b1p, w2p, b2p, w3p, b3p)


@functools.partial(jax.jit, static_argnames=("n_actions",))
def dqn_forward(state, dice_roll, prepared, n_actions):
    """Pallas implementation of DQN.forward(state, dice_roll) (returns f32)."""
    w1, b1, w2, b2, w3, b3 = prepared
    B = state.shape[0]
    Din = w1.shape[0]                                  # 24 (= state + dice)
    NA = w3.shape[1]                                   # padded to 128

    # Batch tile: multiple of 16 (bf16 sublane packing), up to 2048 rows so a
    # grid step moves ~1 MB (well above the fixed per-step cost); grid stays
    # >= 2 for large B so "parallel" can shard across v7x's two TensorCores.
    TB = min(2048, _round_up(max(B, 1), 16))
    Bp = _round_up(B, TB)

    # torch.cat fused here; under jit the concat/cast/pad fuse into one op.
    x = jnp.concatenate([state, dice_roll], axis=1).astype(jnp.bfloat16)
    x = _pad_to(x, (Bp, Din))

    row_map = lambda i: (i, 0)     # batch-tiled operands
    rep_map = lambda i: (0, 0)     # weights/biases stay VMEM-resident

    out = pl.pallas_call(
        dqn_mlp_kernel,
        out_shape=jax.ShapeDtypeStruct((Bp, NA), jnp.bfloat16),
        grid_spec=pltpu.PrefetchScalarGridSpec(
            num_scalar_prefetch=0,
            grid=(Bp // TB,),
            in_specs=[
                pl.BlockSpec((TB, Din), row_map),
                pl.BlockSpec(w1.shape, rep_map),
                pl.BlockSpec(b1.shape, rep_map),
                pl.BlockSpec(w2.shape, rep_map),
                pl.BlockSpec(b2.shape, rep_map),
                pl.BlockSpec(w3.shape, rep_map),
                pl.BlockSpec(b3.shape, rep_map),
            ],
            out_specs=pl.BlockSpec((TB, NA), row_map),
        ),
        compiler_params=pltpu.CompilerParams(
            dimension_semantics=("parallel",)),
    )(x, w1, b1, w2, b2, w3, b3)

    # Slice away padding; return f32 to match the PyTorch module's dtype.
    return out[:B, :n_actions].astype(jnp.float32)


# ---------------------------------------------------------------------------
# Reference (pure JAX, f32) and init matching nn.Linear defaults
# ---------------------------------------------------------------------------
def dqn_reference(state, dice_roll, params):
    w1, b1, w2, b2, w3, b3 = params
    x = jnp.concatenate([state, dice_roll], axis=1).astype(jnp.float32)
    x = jnp.maximum(x @ w1 + b1, 0.0)
    x = jnp.maximum(x @ w2 + b2, 0.0)
    return x @ w3 + b3


def init_linear_params(key, in_features, out_features):
    """nn.Linear default init U(-1/sqrt(in), 1/sqrt(in)); weight transposed
    to (in_features, out_features)."""
    kw, kb = jax.random.split(key)
    bound = 1.0 / jnp.sqrt(jnp.asarray(in_features, jnp.float32))
    w = jax.random.uniform(kw, (in_features, out_features), jnp.float32,
                           minval=-bound, maxval=bound)
    b = jax.random.uniform(kb, (1, out_features), jnp.float32,
                           minval=-bound, maxval=bound)
    return w, b


if __name__ == "__main__":
    # Module hyperparameters (from game.py)
    input_size = 24
    n_actions = 24
    fc1_dims = 32
    fc2_dims = 32

    key = jax.random.PRNGKey(0)
    k1, k2, k3, ks, kd = jax.random.split(key, 5)

    w1, b1 = init_linear_params(k1, input_size, fc1_dims)
    w2, b2 = init_linear_params(k2, fc1_dims, fc2_dims)
    w3, b3 = init_linear_params(k3, fc2_dims, n_actions)
    params = (w1, b1, w2, b2, w3, b3)

    # Example inputs: concat along dim=1 gives input_size = 24 features.
    batch = 2
    state_dim = 22
    dice_dim = 2
    state = jax.random.normal(ks, (batch, state_dim), jnp.float32)
    dice_roll = jax.random.normal(kd, (batch, dice_dim), jnp.float32)

    prepared = prepare_params(params)
    out = dqn_forward(state, dice_roll, prepared, n_actions)
    out = jax.block_until_ready(out)

    assert out.shape == (batch, n_actions), out.shape
    assert out.dtype == jnp.float32, out.dtype

    # Numerical sanity vs f32 reference (bf16 MXU operands + bf16 output
    # store, f32 accumulation).
    ref = dqn_reference(state, dice_roll, params)
    err = float(jnp.max(jnp.abs(out - ref)))
    assert err < 5e-2, err

    # TODO(synk): Adam optimizer / MSELoss / device plumbing in the PyTorch
    # module are training-time setup, not part of forward(), so not translated.
    print("KERNEL_OK")
</pallas_src>

<mosaic_0001>
module attributes {stable_mosaic.version = 11 : i64} {
  func.func @dqn_mlp_kernel(%arg0: i32, %arg1: memref<16x24xbf16, #tpu.memory_space<vmem>>, %arg2: memref<24x128xbf16, #tpu.memory_space<vmem>>, %arg3: memref<1x128xf32, #tpu.memory_space<vmem>>, %arg4: memref<128x128xbf16, #tpu.memory_space<vmem>>, %arg5: memref<1x128xf32, #tpu.memory_space<vmem>>, %arg6: memref<128x128xbf16, #tpu.memory_space<vmem>>, %arg7: memref<1x128xf32, #tpu.memory_space<vmem>>, %arg8: memref<16x128xbf16, #tpu.memory_space<vmem>>) attributes {dimension_semantics = [#tpu.dimension_semantics<parallel>], iteration_bounds = array<i64: 1>, scalar_prefetch = 0 : i64, scratch_operands = 0 : i64, tpu.core_type = #tpu.core_type<tc>, window_params = [{transform_indices = @transform_0, window_bounds = array<i64: 16, 24>}, {pipeline_mode = #tpu.pipeline_mode<synchronous>, transform_indices = @transform_1, window_bounds = array<i64: 24, 128>}, {pipeline_mode = #tpu.pipeline_mode<synchronous>, transform_indices = @transform_2, window_bounds = array<i64: 1, 128>}, {pipeline_mode = #tpu.pipeline_mode<synchronous>, transform_indices = @transform_3, window_bounds = array<i64: 128, 128>}, {pipeline_mode = #tpu.pipeline_mode<synchronous>, transform_indices = @transform_4, window_bounds = array<i64: 1, 128>}, {pipeline_mode = #tpu.pipeline_mode<synchronous>, transform_indices = @transform_5, window_bounds = array<i64: 128, 128>}, {pipeline_mode = #tpu.pipeline_mode<synchronous>, transform_indices = @transform_6, window_bounds = array<i64: 1, 128>}, {transform_indices = @transform_7, window_bounds = array<i64: 16, 128>}]} {
    %c0 = arith.constant 0 : index
    %c0_0 = arith.constant 0 : index
    %0 = vector.load %arg1[%c0, %c0_0] : memref<16x24xbf16, #tpu.memory_space<vmem>>, vector<16x24xbf16>
    %c0_1 = arith.constant 0 : index
    %c0_2 = arith.constant 0 : index
    %1 = vector.load %arg2[%c0_1, %c0_2] : memref<24x128xbf16, #tpu.memory_space<vmem>>, vector<24x128xbf16>
    %cst = arith.constant dense<0.000000e+00> : vector<16x128xf32>
    %2 = tpu.matmul %0, %1, %cst {dimension_numbers = #tpu.dot_dimension_numbers<[1], [0], [0], [1], [0, 0, 1, 1], [], []>} : vector<16x24xbf16>, vector<24x128xbf16>, vector<16x128xf32> -> vector<16x128xf32>
    %c0_3 = arith.constant 0 : index
    %c0_4 = arith.constant 0 : index
    %3 = vector.load %arg3[%c0_3, %c0_4] : memref<1x128xf32, #tpu.memory_space<vmem>>, vector<1x128xf32>
    %4 = vector.broadcast %3 : vector<1x128xf32> to vector<16x128xf32>
    %5 = arith.addf %2, %4 : vector<16x128xf32>
    %cst_5 = arith.constant 0.000000e+00 : f32
    %6 = vector.broadcast %cst_5 : f32 to vector<16x128xf32>
    %7 = arith.maximumf %5, %6 : vector<16x128xf32>
    %8 = arith.truncf %7 : vector<16x128xf32> to vector<16x128xbf16>
    %c0_6 = arith.constant 0 : index
    %c0_7 = arith.constant 0 : index
    %9 = vector.load %arg4[%c0_6, %c0_7] : memref<128x128xbf16, #tpu.memory_space<vmem>>, vector<128x128xbf16>
    %cst_8 = arith.constant dense<0.000000e+00> : vector<16x128xf32>
    %10 = tpu.matmul %8, %9, %cst_8 {dimension_numbers = #tpu.dot_dimension_numbers<[1], [0], [0], [1], [0, 0, 1, 1], [], []>} : vector<16x128xbf16>, vector<128x128xbf16>, vector<16x128xf32> -> vector<16x128xf32>
    %c0_9 = arith.constant 0 : index
    %c0_10 = arith.constant 0 : index
    %11 = vector.load %arg5[%c0_9, %c0_10] : memref<1x128xf32, #tpu.memory_space<vmem>>, vector<1x128xf32>
    %12 = vector.broadcast %11 : vector<1x128xf32> to vector<16x128xf32>
    %13 = arith.addf %10, %12 : vector<16x128xf32>
    %cst_11 = arith.constant 0.000000e+00 : f32
    %14 = vector.broadcast %cst_11 : f32 to vector<16x128xf32>
    %15 = arith.maximumf %13, %14 : vector<16x128xf32>
    %16 = arith.truncf %15 : vector<16x128xf32> to vector<16x128xbf16>
    %c0_12 = arith.constant 0 : index
    %c0_13 = arith.constant 0 : index
    %17 = vector.load %arg6[%c0_12, %c0_13] : memref<128x128xbf16, #tpu.memory_space<vmem>>, vector<128x128xbf16>
    %cst_14 = arith.constant dense<0.000000e+00> : vector<16x128xf32>
    %18 = tpu.matmul %16, %17, %cst_14 {dimension_numbers = #tpu.dot_dimension_numbers<[1], [0], [0], [1], [0, 0, 1, 1], [], []>} : vector<16x128xbf16>, vector<128x128xbf16>, vector<16x128xf32> -> vector<16x128xf32>
    %c0_15 = arith.constant 0 : index
    %c0_16 = arith.constant 0 : index
    %19 = vector.load %arg7[%c0_15, %c0_16] : memref<1x128xf32, #tpu.memory_space<vmem>>, vector<1x128xf32>
    %20 = vector.broadcast %19 : vector<1x128xf32> to vector<16x128xf32>
    %21 = arith.addf %18, %20 : vector<16x128xf32>
    %22 = arith.truncf %21 : vector<16x128xf32> to vector<16x128xbf16>
    %c0_17 = arith.constant 0 : index
    %c0_18 = arith.constant 0 : index
    %23 = vector.load %arg8[%c0_17, %c0_18] : memref<16x128xbf16, #tpu.memory_space<vmem>>, vector<16x128xbf16>
    tpu.vector_store %arg8[%c0_17, %c0_18], %22 {strides = array<i32>} : memref<16x128xbf16, #tpu.memory_space<vmem>>, vector<16x128xbf16>,
    return
  }
  func.func @transform_0(%arg0: i32) -> (i32, i32) {
    %c0_i32 = arith.constant 0 : i32
    %c0_i32_0 = arith.constant 0 : i32
    return %arg0, %c0_i32 : i32, i32
  }
  func.func @transform_1(%arg0: i32) -> (i32, i32) {
    %c0_i32 = arith.constant 0 : i32
    %c0_i32_0 = arith.constant 0 : i32
    %c0_i32_1 = arith.constant 0 : i32
    return %c0_i32, %c0_i32_0 : i32, i32
  }
  func.func @transform_2(%arg0: i32) -> (i32, i32) {
    %c0_i32 = arith.constant 0 : i32
    %c0_i32_0 = arith.constant 0 : i32
    %c0_i32_1 = arith.constant 0 : i32
    return %c0_i32, %c0_i32_0 : i32, i32
  }
  func.func @transform_3(%arg0: i32) -> (i32, i32) {
    %c0_i32 = arith.constant 0 : i32
    %c0_i32_0 = arith.constant 0 : i32
    %c0_i32_1 = arith.constant 0 : i32
    return %c0_i32, %c0_i32_0 : i32, i32
  }
  func.func @transform_4(%arg0: i32) -> (i32, i32) {
    %c0_i32 = arith.constant 0 : i32
    %c0_i32_0 = arith.constant 0 : i32
    %c0_i32_1 = arith.constant 0 : i32
    return %c0_i32, %c0_i32_0 : i32, i32
  }
  func.func @transform_5(%arg0: i32) -> (i32, i32) {
    %c0_i32 = arith.constant 0 : i32
    %c0_i32_0 = arith.constant 0 : i32
    %c0_i32_1 = arith.constant 0 : i32
    return %c0_i32, %c0_i32_0 : i32, i32
  }
  func.func @transform_6(%arg0: i32) -> (i32, i32) {
    %c0_i32 = arith.constant 0 : i32
    %c0_i32_0 = arith.constant 0 : i32
    %c0_i32_1 = arith.constant 0 : i32
    return %c0_i32, %c0_i32_0 : i32, i32
  }
  func.func @transform_7(%arg0: i32) -> (i32, i32) {
    %c0_i32 = arith.constant 0 : i32
    %c0_i32_0 = arith.constant 0 : i32
    return %arg0, %c0_i32 : i32, i32
  }
}

</mosaic_0001>

<bundles_post_ra>
// kernel: dqn_forward.1
= control target key start
LH: loop header
LB: loop body
LE: loop exit
PB: predicated region body
PF: predicated region fallthrough
CT: control target
= control target key end

     0   :  { %12 = vsyncpa [#allocation3], 0  ;;  %s643_s0 = inlined_call_operand.vmem [shape: bf16[16,24], index: 0, kind: input, shape index: {}]   ;;  %s644_s1 = inlined_call_operand.vmem [shape: bf16[24,128], index: 1, kind: input, shape index: {}]   ;;  %s645_s2 = inlined_call_operand.vmem [shape: f32[1,128], index: 2, kind: input, shape index: {}]   ;;  %s646_s3 = inlined_call_operand.hbm [shape: bf16[128,128], index: 3, kind: input, shape index: {}]   ;;  %s647_s4 = inlined_call_operand.vmem [shape: f32[1,128], index: 4, kind: input, shape index: {}]   ;;  %s648_s5 = inlined_call_operand.hbm [shape: bf16[128,128], index: 5, kind: input, shape index: {}]   ;;  %s649_s6 = inlined_call_operand.vmem [shape: f32[1,128], index: 6, kind: input, shape index: {}]   ;;  %s650_s7 = inlined_call_operand.vmem [shape: bf16[16,128], index: 7, kind: output, shape index: {}]  }
   0x1   :  { %13 = vsyncpa [#allocation5], 0  ;;  %s546_s24 = smov [#allocation2]  }
   0x2   :  { %s25_s25 = sshll.u32 %s546_s24, 4  ;;  %s26_s25 = int_to_ptr.vmem [resolvable:$true] %s25_s25 }
   0x3   :  { %s510_s26 = scalar_lea.vmem %s26_s25, 1024  ;;  %p515_p1 = scmp.lt.s32.totalorder %s26_s25, %s26_s25 }
   0x4   :  { %p511_p0 = scmp.ne.s32.totalorder %s26_s25, %s510_s26  ;;  %p516_p2 = scmp.lt.s32.totalorder %s510_s26, %s510_s26 }
   0x6   :  { %p517_p3 = por %p516_p2, %p515_p1 }
   0x8   :  { %p518_p4 = pnand %p517_p3, %p511_p0 }
   0xa   :  { %521 = shalt.err (!%p518_p4)
}
   0xb   :  { %s547_s27 = smov 64   ;;  %s548_s28 = smov 4  }
   0xc   :  { %31 = dma.hbm_to_vmem [thread:$0]  %s646_s3, 1024, %s26_s25, [#allocation3], %s547_s27, %s547_s27, %s548_s28  }
   0xd   :  { %s549_s8 = smov [#allocation4]  }
   0xe   :  { %s39_s9 = sshll.u32 %s549_s8, 4  ;;  %s40_s9 = int_to_ptr.vmem [resolvable:$true] %s39_s9 }
   0xf   :  { %s530_s10 = scalar_lea.vmem %s40_s9, 1024  ;;  %p535_p6 = scmp.lt.s32.totalorder %s40_s9, %s40_s9 }
  0x10   :  { %p531_p5 = scmp.ne.s32.totalorder %s40_s9, %s530_s10  ;;  %p536_p7 = scmp.lt.s32.totalorder %s530_s10, %s530_s10 }
  0x12   :  { %p537_p8 = por %p536_p7, %p535_p6 }
  0x14   :  { %p538_p9 = pnand %p537_p8, %p531_p5 }
  0x16   :  { %541 = shalt.err (!%p538_p9)
}
  0x17   :  { %45 = dma.hbm_to_vmem [thread:$0]  %s648_s5, 1024, %s40_s9, [#allocation5], %s547_s27, %s547_s27, %s548_s28  }
  0x18   :  { %542 = dma.done.wait [#allocation3], 1024  }
  0x19   :  { %543 = vsyncadd [#allocation3], 4294966272 }
  0x1a   :  { %544 = dma.done.wait [#allocation5], 1024  }
  0x1b   :  { %545 = vsyncadd [#allocation5], 4294966272  ;;  %v550_v0 = vmov 0.0   ;;  %vm551_vm0 = vmmov 0   ;;  %vm85_vm1 = vcmask 1043456   ;;  %v484_v3 = vld [vmem:[%s644_s1] sm:$0xff]  }
  0x1c   :  { %429 = vmatprep.subr.bf16.mxu0 %v550_v0  ;;  %433 = vmatprep.mubr.msk.bf16.mxu0 %vm551_vm0, %v550_v0  ;;  %v483_v1 = vld [vmem:[%s644_s1 + $0x8] ss:$0 sps:$4 sm:$0xff]   ;;  %v486_v4 = vld [vmem:[#allocation2 + $0x38] sm:$0xff]   ;;  %v487_v5 = vld [vmem:[#allocation2 + $0x30] sm:$0xff]   ;;  %vm81_vm2 = vcmask 195584  }
  0x1d   :  { %437 = vmatprep.subr.bf16.mxu1 %v550_v0  ;;  %453 = vmatprep.mubr.msk.bf16.mxu1 %vm551_vm0, %v550_v0  ;;  %v87_v2 = vsel %vm85_vm1, %v483_v1, 0  ;;  %v485_v6 = vld [vmem:[%s643_s0] sm:$0xff]   ;;  %v488_v7 = vld [vmem:[#allocation2 + $0x28] sm:$0xff]   ;;  %v490_v9 = vld [vmem:[#allocation2 + $0x18] sm:$0xff]  }
  0x1e   :  { %430 = vmatpush3.bf16.msra.mxu0 %v87_v2  ;;  %438 = vmatpush3.bf16.msra.mxu1 %v486_v4  ;;  %v489_v8 = vld [vmem:[#allocation2 + $0x20] sm:$0xff]   ;;  %v491_v10 = vld [vmem:[#allocation2 + $0x10] sm:$0xff]   ;;  %v492_v11 = vld [vmem:[#allocation2 + $0x8] sm:$0xff]  }
  0x1f   :  { %431 = vmatprep.subr.bf16.mxu0 %v550_v0  ;;  %439 = vmatprep.subr.bf16.mxu1 %v550_v0  ;;  %v493_v12 = vld [vmem:[#allocation2] sm:$0xff]   ;;  %v494_v13 = vld [vmem:[#allocation4 + $0x38] sm:$0xff]   ;;  %v495_v14 = vld [vmem:[#allocation4 + $0x30] sm:$0xff]  }
  0x20   :  { %v496_v15 = vld [vmem:[#allocation4 + $0x28] sm:$0xff]   ;;  %v497_v16 = vld [vmem:[#allocation4 + $0x20] sm:$0xff]   ;;  %v498_v17 = vld [vmem:[#allocation4 + $0x18] sm:$0xff]  }
  0x21   :  { %v376_v18 = vld [vmem:[%s645_s2] ss:$0 sm:$0xff]  ;;  %v499_v28 = vld [vmem:[#allocation4 + $0x10] sm:$0xff]   ;;  %v500_v29 = vld [vmem:[#allocation4 + $0x8] sm:$0xff]  }
  0x22   :  { %432 = vmatpush3.bf16.msra.mxu0 %v484_v3  ;;  %440 = vmatpush3.bf16.msra.mxu1 %v487_v5  ;;  %v501_v30 = vld [vmem:[#allocation4] sm:$0xff]  }
  0x23   :  { %457 = vmatprep.subr.bf16.mxu0 %v550_v0  ;;  %441 = vmatprep.subr.bf16.mxu1 %v550_v0  ;;  %v381_v31 = vld [vmem:[%s647_s4] ss:$0 sm:$0xff] }
  0x24   :  { %v390_v42 = vld [vmem:[%s649_s6] ss:$0 sm:$0xff] }
  0x25   :  { %434 = vmatmul.mubr.msk.bf16.vlgmr.msra.gmra.mxu0 %vm81_vm2, %v485_v6 }
  0x26   :  { %473 = vmatprep.mubr.msk.bf16.mxu0 %vm551_vm0, %v550_v0  ;;  %442 = vmatpush3.bf16.msra.mxu1 %v488_v7 }
  0x27   :  { %443 = vmatprep.subr.bf16.mxu1 %v550_v0  ;;  %458 = vmatpush3.bf16.msra.mxu0 %v494_v13 }
  0x28   :  { %459 = vmatprep.subr.bf16.mxu0 %v550_v0 }
  0x2a   :  { %444 = vmatpush3.bf16.msra.mxu1 %v489_v8 }
  0x2b   :  { %445 = vmatprep.subr.bf16.mxu1 %v550_v0  ;;  %460 = vmatpush3.bf16.msra.mxu0 %v495_v14 }
  0x2c   :  { %461 = vmatprep.subr.bf16.mxu0 %v550_v0 }
  0x2e   :  { %446 = vmatpush3.bf16.msra.mxu1 %v490_v9 }
  0x2f   :  { %447 = vmatprep.subr.bf16.mxu1 %v550_v0  ;;  %462 = vmatpush3.bf16.msra.mxu0 %v496_v15 }
  0x30   :  { %463 = vmatprep.subr.bf16.mxu0 %v550_v0 }
  0x32   :  { %448 = vmatpush3.bf16.msra.mxu1 %v491_v10 }
  0x33   :  { %449 = vmatprep.subr.bf16.mxu1 %v550_v0  ;;  %464 = vmatpush3.bf16.msra.mxu0 %v497_v16 }
  0x34   :  { %465 = vmatprep.subr.bf16.mxu0 %v550_v0 }
  0x36   :  { %450 = vmatpush3.bf16.msra.mxu1 %v492_v11 }
  0x37   :  { %451 = vmatprep.subr.bf16.mxu1 %v550_v0  ;;  %466 = vmatpush3.bf16.msra.mxu0 %v498_v17 }
  0x38   :  { %467 = vmatprep.subr.bf16.mxu0 %v550_v0 }
  0x3a   :  { %452 = vmatpush3.bf16.msra.mxu1 %v493_v12 }
  0x3b   :  { %468 = vmatpush3.bf16.msra.mxu0 %v499_v28 }
  0x3c   :  { %469 = vmatprep.subr.bf16.mxu0 %v550_v0 }
  0x3f   :  { %470 = vmatpush3.bf16.msra.mxu0 %v500_v29 }
  0x40   :  { %471 = vmatprep.subr.bf16.mxu0 %v550_v0 }
  0x43   :  { %472 = vmatpush3.bf16.msra.mxu0 %v501_v30 }
  0xe5   :  { %v123_v19 = vpop.f32.mrf.mxu0 }
  0xe6   :  { %v124_v21 = vadd.f32 %v376_v18, %v123_v19 }
  0xe7   :  { %v435_v20 = vpop.f32.mrf.mxu0 }
  0xe8   :  { %v130_v25 = vmax.f32 %v124_v21, 0.0 }
  0xe9   :  { %v126_v22 = vpop.f32.mrf.mxu0 }
  0xea   :  { %v127_v23 = vadd.f32 %v376_v18, %v126_v22 }
  0xeb   :  { %v436_v24 = vpop.f32.mrf.mxu0 }
  0xec   :  { %v131_v26 = vmax.f32 %v127_v23, 0.0 }
  0xee   :  { %v132_v27 = vpack.c.bf16 %v131_v26, %v130_v25 }
  0xf0   :  { %454 = vmatmul.mubr.bf16.vlgmr.msra.gmra.mxu1 %v132_v27 }
 0x1b0   :  { %v238_v32 = vpop.f32.mrf.mxu1 }
 0x1b1   :  { %v239_v34 = vadd.f32 %v381_v31, %v238_v32 }
 0x1b2   :  { %v455_v33 = vpop.f32.mrf.mxu1 }
 0x1b3   :  { %v245_v38 = vmax.f32 %v239_v34, 0.0 }
 0x1b4   :  { %v241_v35 = vpop.f32.mrf.mxu1 }
 0x1b5   :  { %v242_v36 = vadd.f32 %v381_v31, %v241_v35 }
 0x1b6   :  { %v456_v37 = vpop.f32.mrf.mxu1 }
 0x1b7   :  { %v246_v39 = vmax.f32 %v242_v36, 0.0 }
 0x1b9   :  { %v247_v40 = vpack.c.bf16 %v246_v39, %v245_v38 }
 0x1bb   :  { %474 = vmatmul.mubr.bf16.vlgmr.msra.gmra.mxu0 %v247_v40 }
 0x27b   :  { %v353_v41 = vpop.f32.mrf.mxu0 }
 0x27c   :  { %v354_v45 = vadd.f32 %v390_v42, %v353_v41 }
 0x27d   :  { %v475_v43 = vpop.f32.mrf.mxu0 }
 0x27f   :  { %v356_v44 = vpop.f32.mrf.mxu0 }
 0x280   :  { %v357_v46 = vadd.f32 %v390_v42, %v356_v44 }
 0x281   :  { %v476_v47 = vpop.f32.mrf.mxu0 }
 0x282   :  { %v406_v48 = vpack.c.bf16 %v357_v46, %v354_v45 }
 0x284   :  { %407 = vst [vmem:[%s650_s7] sm:$0xff] %v406_v48  }
 0x285   :  { %374 = vsyncpa [#allocation3], 1 }
 0x286   :  { %375 = vsyncpa [#allocation5], 1 }

</bundles_post_ra>
